<compile_context>
chip_gen: v5e
topology: v5e:2x2
jax: 0.10.0
libtpu: 0.0.40
codegen_flags: <defaults>
</compile_context>

<pallas_src>
import functools

import jax
import jax.numpy as jnp
from jax.experimental import pallas as pl
from jax.experimental.pallas import tpu as pltpu


def _round_up(x, m):
    return ((x + m - 1) // m) * m


def _tagger_mlp_kernel(x_ref, w1_ref, b1_ref, w2_ref, b2_ref, out_ref, *,
                       num_classes):
    # x_ref: (TILE_B, input_dim) bf16; w1/w2 bf16; b1/b2 f32 (1, N_pad).
    x = x_ref[...]

    # hidden = tanh(x @ W1 + b1)  -- bf16 MXU matmul, f32 accumulate,
    # f32 tanh (fast path on v5e which has no bf16 VPU/EUP).
    h = jnp.tanh(
        jnp.dot(x, w1_ref[...], preferred_element_type=jnp.float32)
        + b1_ref[...]
    )

    # logits = h @ W2 + b2
    logits = (
        jnp.dot(h.astype(jnp.bfloat16), w2_ref[...],
                preferred_element_type=jnp.float32)
        + b2_ref[...]
    )

    # Mask padded class columns so they contribute nothing to the softmax.
    col = jax.lax.broadcasted_iota(jnp.int32, logits.shape, 1)
    logits = jnp.where(col < num_classes, logits, jnp.float32(-1e30))

    # softmax over dim=1 (class axis); denominator via EUP approx reciprocal.
    m = jnp.max(logits, axis=1, keepdims=True)
    e = jnp.exp(logits - m)
    denom = jnp.sum(e, axis=1, keepdims=True)
    out_ref[...] = e * pl.reciprocal(denom, approx=True)


def tagger_forward(x, params, *, tile_b=512):
    """x: (batch, window) int32 word ids."""
    (embed_w, embed_pre_w, embed_suf_w,
     prefix_of_word, suffix_of_word,
     w1, b1, w2, b2) = params

    batch, window = x.shape
    embed_len = embed_w.shape[1]
    input_dim = window * embed_len
    hidden_size = w1.shape[1]
    output_size = w2.shape[1]

    # ---- glue: index remapping + embedding gathers + 3-way sum (plain JAX,
    # fused by XLA into a single gather+add fusion -> one HBM stream) ----
    prefix_idx = jnp.take(prefix_of_word, x, axis=0)          # (B, W)
    suffix_idx = jnp.take(suffix_of_word, x, axis=0)          # (B, W)

    normal_embed = jnp.take(embed_w, x, axis=0)               # (B, W, E)
    prefix_embed = jnp.take(embed_pre_w, prefix_idx, axis=0)  # (B, W, E)
    suffix_embed = jnp.take(embed_suf_w, suffix_idx, axis=0)  # (B, W, E)

    xs = (normal_embed + prefix_embed + suffix_embed)
    xs = xs.reshape(batch, input_dim).astype(jnp.bfloat16)    # (B, D_in) bf16

    # ---- pad batch to a whole number of tiles (bf16 sublane pack = 16) ----
    if batch >= tile_b:
        tb = tile_b
    else:
        tb = max(16, _round_up(batch, 16))
    b_pad = _round_up(batch, tb)
    if b_pad != batch:
        xs = jnp.pad(xs, ((0, b_pad - batch), (0, 0)))

    # ---- pad hidden/output to 128 lanes (zero columns/rows) ----
    h_pad = _round_up(max(hidden_size, 128), 128)
    o_pad = _round_up(max(output_size, 128), 128)

    w1p = jnp.zeros((input_dim, h_pad), jnp.bfloat16)
    w1p = w1p.at[:, :hidden_size].set(w1.astype(jnp.bfloat16))
    b1p = jnp.zeros((1, h_pad), jnp.float32).at[:, :hidden_size].set(b1)

    w2p = jnp.zeros((h_pad, o_pad), jnp.bfloat16)
    w2p = w2p.at[:hidden_size, :output_size].set(w2.astype(jnp.bfloat16))
    b2p = jnp.zeros((1, o_pad), jnp.float32).at[:, :output_size].set(b2)

    grid = (b_pad // tb,)

    kernel = functools.partial(_tagger_mlp_kernel, num_classes=output_size)

    out_full = pl.pallas_call(
        kernel,
        out_shape=jax.ShapeDtypeStruct((b_pad, o_pad), jnp.float32),
        grid_spec=pltpu.PrefetchScalarGridSpec(
            num_scalar_prefetch=0,
            grid=grid,
            in_specs=[
                # batch-tiled activations
                pl.BlockSpec((tb, input_dim), lambda i: (i, 0)),
                # grid-invariant weights: stay resident in VMEM across tiles
                pl.BlockSpec((input_dim, h_pad), lambda i: (0, 0)),
                pl.BlockSpec((1, h_pad), lambda i: (0, 0)),
                pl.BlockSpec((h_pad, o_pad), lambda i: (0, 0)),
                pl.BlockSpec((1, o_pad), lambda i: (0, 0)),
            ],
            out_specs=pl.BlockSpec((tb, o_pad), lambda i: (i, 0)),
        ),
        compiler_params=pltpu.CompilerParams(
            dimension_semantics=("parallel",),
        ),
    )(xs, w1p, b1p, w2p, b2p)

    # slice away batch / class padding
    return out_full[:batch, :output_size]


def init_params(key, vocab_size, prefix_size, suffix_size,
                embedding_length, window_size, hidden_size, output_size):
    ks = jax.random.split(key, 8)
    input_dim = window_size * embedding_length

    # embeddings: uniform(-1, 1)  (matches nn.init.uniform_(-1.0, 1.0))
    embed_w = jax.random.uniform(ks[0], (vocab_size, embedding_length),
                                 jnp.float32, -1.0, 1.0)
    embed_pre_w = jax.random.uniform(ks[1], (prefix_size, embedding_length),
                                     jnp.float32, -1.0, 1.0)
    embed_suf_w = jax.random.uniform(ks[2], (suffix_size, embedding_length),
                                     jnp.float32, -1.0, 1.0)

    # deterministic word -> prefix/suffix index tables (stand-ins for PRE2I/SUF2I)
    prefix_of_word = (jnp.arange(vocab_size, dtype=jnp.int32) * 7 + 3) % prefix_size
    suffix_of_word = (jnp.arange(vocab_size, dtype=jnp.int32) * 5 + 1) % suffix_size

    # Linear layers: Kaiming-uniform-ish bounds, stored as (in, out)
    lim1 = 1.0 / jnp.sqrt(input_dim)
    w1 = jax.random.uniform(ks[3], (input_dim, hidden_size),
                            jnp.float32, -lim1, lim1)
    b1 = jax.random.uniform(ks[4], (1, hidden_size), jnp.float32, -lim1, lim1)

    lim2 = 1.0 / jnp.sqrt(hidden_size)
    w2 = jax.random.uniform(ks[5], (hidden_size, output_size),
                            jnp.float32, -lim2, lim2)
    b2 = jax.random.uniform(ks[6], (1, output_size), jnp.float32, -lim2, lim2)

    return (embed_w, embed_pre_w, embed_suf_w,
            prefix_of_word, suffix_of_word,
            w1, b1, w2, b2)


if __name__ == "__main__":
    # small shapes consistent with the module
    batch = 2
    window_size = 5
    embedding_length = 32
    hidden_size = 32
    output_size = 8
    vocab_size = 100
    prefix_size = 20
    suffix_size = 20

    key = jax.random.PRNGKey(0)
    k_params, k_x = jax.random.split(key)

    params = init_params(k_params, vocab_size, prefix_size, suffix_size,
                         embedding_length, window_size, hidden_size,
                         output_size)

    x = jax.random.randint(k_x, (batch, window_size), 0, vocab_size,
                           dtype=jnp.int32)

    out = tagger_forward(x, params)
    out = jax.block_until_ready(out)

    assert out.shape == (batch, output_size)
    # rows of a softmax must sum to 1 (approx reciprocal + bf16 matmuls ->
    # relax tolerance)
    assert bool(jnp.allclose(jnp.sum(out, axis=1), 1.0, atol=1e-2))
    assert bool(jnp.all(jnp.isfinite(out)))

    print("KERNEL_OK")
</pallas_src>

<mosaic_0001>
module attributes {stable_mosaic.version = 11 : i64} {
  func.func @_tagger_mlp_kernel(%arg0: i32, %arg1: memref<16x160xbf16, #tpu.memory_space<vmem>>, %arg2: memref<160x128xbf16, #tpu.memory_space<vmem>>, %arg3: memref<1x128xf32, #tpu.memory_space<vmem>>, %arg4: memref<128x128xbf16, #tpu.memory_space<vmem>>, %arg5: memref<1x128xf32, #tpu.memory_space<vmem>>, %arg6: memref<16x128xf32, #tpu.memory_space<vmem>>) attributes {dimension_semantics = [#tpu.dimension_semantics<parallel>], iteration_bounds = array<i64: 1>, scalar_prefetch = 0 : i64, scratch_operands = 0 : i64, tpu.core_type = #tpu.core_type<tc>, window_params = [{transform_indices = @transform_0, window_bounds = array<i64: 16, 160>}, {pipeline_mode = #tpu.pipeline_mode<synchronous>, transform_indices = @transform_1, window_bounds = array<i64: 160, 128>}, {pipeline_mode = #tpu.pipeline_mode<synchronous>, transform_indices = @transform_2, window_bounds = array<i64: 1, 128>}, {pipeline_mode = #tpu.pipeline_mode<synchronous>, transform_indices = @transform_3, window_bounds = array<i64: 128, 128>}, {pipeline_mode = #tpu.pipeline_mode<synchronous>, transform_indices = @transform_4, window_bounds = array<i64: 1, 128>}, {transform_indices = @transform_5, window_bounds = array<i64: 16, 128>}]} {
    %c0 = arith.constant 0 : index
    %c0_0 = arith.constant 0 : index
    %0 = vector.load %arg1[%c0, %c0_0] : memref<16x160xbf16, #tpu.memory_space<vmem>>, vector<16x160xbf16>
    %c0_1 = arith.constant 0 : index
    %c0_2 = arith.constant 0 : index
    %1 = vector.load %arg2[%c0_1, %c0_2] : memref<160x128xbf16, #tpu.memory_space<vmem>>, vector<160x128xbf16>
    %cst = arith.constant dense<0.000000e+00> : vector<16x128xf32>
    %2 = tpu.matmul %0, %1, %cst {dimension_numbers = #tpu.dot_dimension_numbers<[1], [0], [0], [1], [0, 0, 1, 1], [], []>} : vector<16x160xbf16>, vector<160x128xbf16>, vector<16x128xf32> -> vector<16x128xf32>
    %c0_3 = arith.constant 0 : index
    %c0_4 = arith.constant 0 : index
    %3 = vector.load %arg3[%c0_3, %c0_4] : memref<1x128xf32, #tpu.memory_space<vmem>>, vector<1x128xf32>
    %4 = vector.broadcast %3 : vector<1x128xf32> to vector<16x128xf32>
    %5 = arith.addf %2, %4 : vector<16x128xf32>
    %6 = math.tanh %5 : vector<16x128xf32>
    %7 = arith.truncf %6 : vector<16x128xf32> to vector<16x128xbf16>
    %c0_5 = arith.constant 0 : index
    %c0_6 = arith.constant 0 : index
    %8 = vector.load %arg4[%c0_5, %c0_6] : memref<128x128xbf16, #tpu.memory_space<vmem>>, vector<128x128xbf16>
    %cst_7 = arith.constant dense<0.000000e+00> : vector<16x128xf32>
    %9 = tpu.matmul %7, %8, %cst_7 {dimension_numbers = #tpu.dot_dimension_numbers<[1], [0], [0], [1], [0, 0, 1, 1], [], []>} : vector<16x128xbf16>, vector<128x128xbf16>, vector<16x128xf32> -> vector<16x128xf32>
    %c0_8 = arith.constant 0 : index
    %c0_9 = arith.constant 0 : index
    %10 = vector.load %arg5[%c0_8, %c0_9] : memref<1x128xf32, #tpu.memory_space<vmem>>, vector<1x128xf32>
    %11 = vector.broadcast %10 : vector<1x128xf32> to vector<16x128xf32>
    %12 = arith.addf %9, %11 : vector<16x128xf32>
    %13 = tpu.iota {dimensions = array<i32: 1>} : vector<16x128xi32>
    %c8_i32 = arith.constant 8 : i32
    %14 = vector.broadcast %c8_i32 : i32 to vector<16x128xi32>
    %15 = arith.cmpi slt, %13, %14 : vector<16x128xi32>
    %cst_10 = arith.constant -1.000000e+30 : f32
    %16 = vector.broadcast %cst_10 : f32 to vector<16x128xf32>
    %17 = arith.select %15, %12, %16 : vector<16x128xi1>, vector<16x128xf32>
    %cst_11 = arith.constant dense<0xFF800000> : vector<16xf32>
    %18 = vector.multi_reduction <maximumf>, %17, %cst_11 [1] : vector<16x128xf32> to vector<16xf32>
    %19 = vector.shape_cast %18 : vector<16xf32> to vector<16x1xf32>
    %20 = vector.broadcast %19 : vector<16x1xf32> to vector<16x128xf32>
    %21 = arith.subf %17, %20 : vector<16x128xf32>
    %22 = math.exp %21 : vector<16x128xf32>
    %cst_12 = arith.constant dense<0.000000e+00> : vector<16xf32>
    %23 = vector.multi_reduction <add>, %22, %cst_12 [1] : vector<16x128xf32> to vector<16xf32>
    %24 = vector.shape_cast %23 : vector<16xf32> to vector<16x1xf32>
    %25 = tpu.reciprocal %24 {approx = true} : vector<16x1xf32> -> vector<16x1xf32>
    %26 = vector.broadcast %25 : vector<16x1xf32> to vector<16x128xf32>
    %27 = arith.mulf %22, %26 : vector<16x128xf32>
    %c0_13 = arith.constant 0 : index
    %c0_14 = arith.constant 0 : index
    %28 = vector.load %arg6[%c0_13, %c0_14] : memref<16x128xf32, #tpu.memory_space<vmem>>, vector<16x128xf32>
    tpu.vector_store %arg6[%c0_13, %c0_14], %27 {strides = array<i32>} : memref<16x128xf32, #tpu.memory_space<vmem>>, vector<16x128xf32>,
    return
  }
  func.func @transform_0(%arg0: i32) -> (i32, i32) {
    %c0_i32 = arith.constant 0 : i32
    %c0_i32_0 = arith.constant 0 : i32
    return %arg0, %c0_i32 : i32, i32
  }
  func.func @transform_1(%arg0: i32) -> (i32, i32) {
    %c0_i32 = arith.constant 0 : i32
    %c0_i32_0 = arith.constant 0 : i32
    %c0_i32_1 = arith.constant 0 : i32
    return %c0_i32, %c0_i32_0 : i32, i32
  }
  func.func @transform_2(%arg0: i32) -> (i32, i32) {
    %c0_i32 = arith.constant 0 : i32
    %c0_i32_0 = arith.constant 0 : i32
    %c0_i32_1 = arith.constant 0 : i32
    return %c0_i32, %c0_i32_0 : i32, i32
  }
  func.func @transform_3(%arg0: i32) -> (i32, i32) {
    %c0_i32 = arith.constant 0 : i32
    %c0_i32_0 = arith.constant 0 : i32
    %c0_i32_1 = arith.constant 0 : i32
    return %c0_i32, %c0_i32_0 : i32, i32
  }
  func.func @transform_4(%arg0: i32) -> (i32, i32) {
    %c0_i32 = arith.constant 0 : i32
    %c0_i32_0 = arith.constant 0 : i32
    %c0_i32_1 = arith.constant 0 : i32
    return %c0_i32, %c0_i32_0 : i32, i32
  }
  func.func @transform_5(%arg0: i32) -> (i32, i32) {
    %c0_i32 = arith.constant 0 : i32
    %c0_i32_0 = arith.constant 0 : i32
    return %arg0, %c0_i32 : i32, i32
  }
}

</mosaic_0001>

<bundles_post_ra>
// kernel: tpu_custom_call.1
= control target key start
LH: loop header
LB: loop body
LE: loop exit
PB: predicated region body
PF: predicated region fallthrough
CT: control target
= control target key end

     0   :  { %10 = vsyncpa [#allocation3], 0  ;;  %s613_s0 = inlined_call_operand.hbm [shape: bf16[16,160], index: 0, kind: input, shape index: {}]   ;;  %s614_s1 = inlined_call_operand.hbm [shape: bf16[160,128], index: 1, kind: input, shape index: {}]   ;;  %s615_s2 = inlined_call_operand.vmem [shape: f32[1,128], index: 2, kind: input, shape index: {}]   ;;  %s616_s3 = inlined_call_operand.hbm [shape: bf16[128,128], index: 3, kind: input, shape index: {}]   ;;  %s617_s4 = inlined_call_operand.vmem [shape: f32[1,128], index: 4, kind: input, shape index: {}]   ;;  %s618_s5 = inlined_call_operand.hbm [shape: f32[16,128], index: 5, kind: output, shape index: {}]  }
   0x1   :  { %11 = vsyncpa [#allocation6], 0  ;;  %s30_s20 = sshll.u32 %s614_s1, 4  ;;  %s31_s20 = int_to_ptr.hbm [resolvable:$true] %s30_s20 }
   0x2   :  { %12 = vsyncpa [#allocation4], 0  ;;  %s551_s21 = smov [#allocation5]   ;;  %s17_s25 = sshll.u32 %s613_s0, 4  ;;  %s18_s25 = int_to_ptr.hbm [resolvable:$true] %s17_s25 }
   0x3   :  { %s32_s22 = sshll.u32 %s551_s21, 4  ;;  %s552_s26 = smov 64   ;;  %s33_s22 = int_to_ptr.vmem [resolvable:$true] %s32_s22 }
   0x4   :  { %s553_s27 = smov 4   ;;  %s554_s28 = smov [#allocation2]  }
   0x5   :  { %38 = dma.hbm_to_vmem [thread:$0]  %s31_s20, 1280, %s33_s22, [#allocation6], %s552_s26, %s552_s26, %s553_s27  }
   0x6   :  { %s19_s29 = sshll.u32 %s554_s28, 4  ;;  %s555_s30 = smov 128   ;;  %s20_s29 = int_to_ptr.vmem [resolvable:$true] %s19_s29 }
   0x7   :  { %s556_s6 = smov 8   ;;  %s45_s8 = sshll.u32 %s616_s3, 4  ;;  %s46_s8 = int_to_ptr.hbm [resolvable:$true] %s45_s8 }
   0x8   :  { %25 = dma.hbm_to_vmem [thread:$0]  %s18_s25, 256, %s20_s29, [#allocation3], %s555_s30, %s555_s30, %s556_s6  }
   0x9   :  { %s557_s9 = smov [#allocation7]  }
   0xa   :  { %s47_s0 = sshll.u32 %s557_s9, 4  ;;  %s48_s0 = int_to_ptr.vmem [resolvable:$true] %s47_s0 }
   0xb   :  { %53 = dma.hbm_to_vmem [thread:$0]  %s46_s8, 1024, %s48_s0, [#allocation6], %s552_s26, %s552_s26, %s553_s27  }
   0xc   :  { %545 = dma.done.wait [#allocation3], 256  }
   0xd   :  { %546 = vsyncadd [#allocation3], 4294967040 }
   0xe   :  { %547 = dma.done.wait [#allocation6], 2304  }
   0xf   :  { %548 = vsyncadd [#allocation6], 4294964992  ;;  %v416_v0 = vld [vmem:[#allocation5 + $0x38] sm:$0xff]  ;;  %v418_v1 = vld [vmem:[#allocation5 + $0x48] sm:$0xff]  ;;  %vm164_vm0 = vcmask 261120   ;;  %v281_v36 = vlaneseq  ;;  %s312_s15 = sshll.u32 %s618_s5, 4  ;;  %s313_s15 = int_to_ptr.hbm [resolvable:$true] %s312_s15 }
  0x10   :  { %168 = vmatpush.bf16.msra.mxu0 %v416_v0  ;;  %v415_v2 = vld [vmem:[#allocation5 + $0x30] sm:$0xff]  ;;  %188 = vmatpush.bf16.msra.mxu1 %v418_v1  ;;  %v417_v3 = vld [vmem:[#allocation5 + $0x40] sm:$0xff]  ;;  %v330_v5 = vld [vmem:[#allocation2 + $0x8] sm:$0xf0] }
  0x11   :  { %v407_v4 = vld [vmem:[#allocation2 + $0x4] sm:$0xf]  ;;  %v426_v6 = vld [vmem:[#allocation7 + $0x38] sm:$0xff]  ;;  %v413_v9 = vld [vmem:[#allocation5 + $0x20] sm:$0xff]  ;;  %v282_v37 = vand.u32 127, %v281_v36 }
  0x12   :  { %v414_v7 = vld [vmem:[#allocation5 + $0x28] sm:$0xff]  ;;  %v333_v8 = vor.u32 %v407_v4, %v330_v5  ;;  %267 = vmatpush.bf16.msra.mxu2 %v426_v6  ;;  %v412_v10 = vld [vmem:[#allocation5 + $0x18] sm:$0xff]  ;;  %v411_v11 = vld [vmem:[#allocation5 + $0x10] sm:$0xff] }
  0x13   :  { %v410_v12 = vld [vmem:[#allocation5 + $0x8] sm:$0xff]  ;;  %v409_v13 = vld [vmem:[#allocation5] sm:$0xff]  ;;  %v328_v14 = vld [vmem:[#allocation2] sm:$0xf]  ;;  %vm283_vm1 = vcmp.lt.s32.totalorder %v282_v37, 8 }
  0x14   :  { %169 = vmatpush.bf16.msra.mxu0 %v415_v2  ;;  %189 = vmatpush.bf16.msra.mxu1 %v417_v3  ;;  %v408_v15 = vld [vmem:[#allocation2 + $0x4] sm:$0xf0]  ;;  %v425_v17 = vld [vmem:[#allocation7 + $0x30] sm:$0xff]  ;;  %v423_v19 = vld [vmem:[#allocation7 + $0x20] sm:$0xff] }
  0x15   :  { %v329_v16 = vor.u32 %v408_v15, %v328_v14  ;;  %v424_v18 = vld [vmem:[#allocation7 + $0x28] sm:$0xff]  ;;  %v422_v20 = vld [vmem:[#allocation7 + $0x18] sm:$0xff]  ;;  %v421_v21 = vld [vmem:[#allocation7 + $0x10] sm:$0xff] }
  0x16   :  { %268 = vmatpush.bf16.msra.mxu2 %v425_v17  ;;  %v420_v22 = vld [vmem:[#allocation7 + $0x8] sm:$0xff]  ;;  %v419_v23 = vld [vmem:[#allocation7] sm:$0xff] }
  0x17   :  { %374 = vmatmul.msk.bf16.vlgmr.msra.gmra.mxu1 %vm164_vm0, %v333_v8  ;;  %v435_v25 = vld [vmem:[%s615_s2] ss:$0 sm:$0xff]  ;;  %s558_s2 = smov [#allocation8]  }
  0x18   :  { %170 = vmatpush.bf16.msra.mxu0 %v414_v7  ;;  %v436_v38 = vld [vmem:[%s617_s4] ss:$0 sm:$0xff]  ;;  %s310_s4 = sshll.u32 %s558_s2, 4  ;;  %s311_s4 = int_to_ptr.vmem [resolvable:$true] %s310_s4 }
  0x1a   :  { %269 = vmatpush.bf16.msra.mxu2 %v424_v18 }
  0x1c   :  { %171 = vmatpush.bf16.msra.mxu0 %v413_v9 }
  0x1e   :  { %270 = vmatpush.bf16.msra.mxu2 %v423_v19 }
  0x20   :  { %172 = vmatpush.bf16.msra.mxu0 %v412_v10 }
  0x22   :  { %271 = vmatpush.bf16.msra.mxu2 %v422_v20 }
  0x24   :  { %173 = vmatpush.bf16.msra.mxu0 %v411_v11 }
  0x26   :  { %272 = vmatpush.bf16.msra.mxu2 %v421_v21 }
  0x28   :  { %174 = vmatpush.bf16.msra.mxu0 %v410_v12 }
  0x2a   :  { %273 = vmatpush.bf16.msra.mxu2 %v420_v22 }
  0x2c   :  { %175 = vmatpush.bf16.msra.mxu0 %v409_v13 }
  0x2e   :  { %274 = vmatpush.bf16.msra.mxu2 %v419_v23 }
  0x2f   :  { %176 = vmatmul.bf16.vlgmr.msra.gmra.mxu0 %v329_v16 }
  0x94   :  { %v191_v24 = vpop.f32.mrf.mxu1 }
  0x9c   :  { %v193_v31 = vpop.f32.mrf.mxu1 }
  0xac   :  { %v177_v26 = vpop.f32.mrf.mxu0 }
  0xad   :  { %v178_v27 = vadd.f32 %v435_v25, %v177_v26 }
  0xaf   :  { %v192_v28 = vadd.f32 %v191_v24, %v178_v27 }
  0xb1   :  { %437 = vtanh.f32 %v192_v28 }
  0xb4   :  { %v179_v29 = vpop.f32.mrf.mxu0 }
  0xb5   :  { %v180_v30 = vadd.f32 %v435_v25, %v179_v29 }
  0xb7   :  { %v194_v32 = vadd.f32 %v193_v31, %v180_v30  ;;  %v438_v33 = vpop.eup %437 }
  0xb9   :  { %439 = vtanh.f32 %v194_v32 }
  0xbf   :  { %v440_v34 = vpop.eup %439 }
  0xc0   :  { %v198_v35 = vpack.c.bf16 %v440_v34, %v438_v33 }
  0xc2   :  { %275 = vmatmul.bf16.vlgmr.msra.gmra.mxu2 %v198_v35 }
 0x145   :  { %v276_v39 = vpop.f32.mrf.mxu2 }
 0x146   :  { %v277_v40 = vadd.f32 %v436_v38, %v276_v39 }
 0x148   :  { %v284_v41 = vsel %vm283_vm1, %v277_v40, -1e+30 }
 0x149   :  { %286 = vmax.xlane.f32.xlu0 %v284_v41 }
 0x14d   :  { %v278_v42 = vpop.f32.mrf.mxu2 }
 0x14e   :  { %v279_v43 = vadd.f32 %v436_v38, %v278_v42 }
 0x150   :  { %v285_v44 = vsel %vm283_vm1, %v279_v43, -1e+30 }
 0x151   :  { %288 = vmax.xlane.f32.xlu0 %v285_v44 }
 0x1bc   :  { %v287_v45 = vpop.xlane.xlu0 %286 }
 0x1bd   :  { %v290_v46 = vsub.f32 %v284_v41, %v287_v45 }
 0x1bf   :  { %v292_v47 = vmul.f32 1.442695, %v290_v46 }
 0x1c1   :  { %441 = vpow2.f32 %v292_v47 }
 0x1c4   :  { %v289_v48 = vpop.xlane.xlu0 %288 }
 0x1c5   :  { %v291_v49 = vsub.f32 %v285_v44, %v289_v48 }
 0x1c7   :  { %v442_v50 = vpop.eup %441  ;;  %v294_v51 = vmul.f32 1.442695, %v291_v49 }
 0x1c8   :  { %296 = vadd.xlane.f32.xlu1 %v442_v50 }
 0x1c9   :  { %443 = vpow2.f32 %v294_v51 }
 0x1cf   :  { %v444_v52 = vpop.eup %443 }
 0x1d0   :  { %298 = vadd.xlane.f32.xlu1 %v444_v52 }
 0x23b   :  { %v297_v53 = vpop.xlane.xlu1 %296 }
 0x23c   :  { %445 = vrcp.f32 %v297_v53 }
 0x242   :  { %v446_v54 = vpop.eup %445 }
 0x243   :  { %v302_v55 = vmul.f32 %v446_v54, %v442_v50  ;;  %v299_v56 = vpop.xlane.xlu1 %298 }
 0x244   :  { %447 = vrcp.f32 %v299_v56 }
 0x245   :  { %304 = vst [vmem:[#allocation8] sm:$0xff] %v302_v55 }
 0x24a   :  { %v448_v57 = vpop.eup %447 }
 0x24b   :  { %v303_v58 = vmul.f32 %v448_v57, %v444_v52 }
 0x24d   :  { %305 = vst [vmem:[#allocation8 + $0x8] sm:$0xff] %v303_v58 }
 0x24e   :  { %318 = dma.vmem_to_hbm [thread:$0]  %s311_s4, 256, %s313_s15, [#allocation4], %s555_s30, %s555_s30, %s556_s6  }
 0x24f   :  { %549 = dma.done.wait [#allocation4], 256  }
 0x250   :  { %550 = vsyncadd [#allocation4], 4294967040 }
 0x251   :  { %323 = vsyncpa [#allocation3], 1 }
 0x252   :  { %324 = vsyncpa [#allocation6], 1 }
 0x253   :  { %325 = vsyncpa [#allocation4], 1 }

</bundles_post_ra>
